<compile_context>
chip_gen: v7x
topology: tpu7x:2x2x1
jax: 0.10.0
libtpu: 0.0.40
codegen_flags: <defaults>
</compile_context>

<pallas_src>
import jax
import jax.numpy as jnp
from jax.experimental import pallas as pl
from jax.experimental.pallas import tpu as pltpu


def _round_up(x, m):
    return ((x + m - 1) // m) * m


def _vmem_capacity_bytes():
    """Physical VMEM per TensorCore (64 MiB on v7x, 128 MiB on v5e/v6e)."""
    try:
        return int(pltpu.get_tpu_info().vmem_capacity_bytes)
    except Exception:
        pass
    try:
        kind = jax.devices()[0].device_kind.lower()
        if any(tag in kind for tag in ("v4", "v5", "v6")):
            return 128 << 20
    except Exception:
        pass
    return 64 << 20  # conservative default (v7x per-core VMEM)


def _make_gate_kernel(n_src):
    def kernel(*refs):
        x_refs = refs[:n_src]
        l_refs = refs[n_src:2 * n_src]
        b_ref = refs[2 * n_src]
        out_ref = refs[2 * n_src + 1]

        # Accumulate per-source contributions of the fused projection on the MXU.
        acc = jnp.dot(x_refs[0][...], l_refs[0][...],
                      preferred_element_type=jnp.float32)
        for xr, lr in zip(x_refs[1:], l_refs[1:]):
            acc = acc + jnp.dot(xr[...], lr[...],
                                preferred_element_type=jnp.float32)

        z = acc + b_ref[...]                              # (TILE_B, k) logits
        z = z - jnp.max(z, axis=-1, keepdims=True)        # numerically stable softmax
        e = jnp.exp(z)
        # Exact divide (not pl.reciprocal approx) so row sums match 1 to ~1e-6.
        out_ref[...] = (e / jnp.sum(e, axis=-1, keepdims=True)).astype(out_ref.dtype)

    return kernel


def gate_forward(srcs, L, R, b, *, tile_b=None):
    """srcs: sequence of (B, d_i, h) arrays; L: (d_all*h, k); R: (1, k) or (k,);
    b: (k,).  Returns the softmax gate weights, shape (B, k), float32."""
    srcs = list(srcs)
    n_src = len(srcs)
    B = srcs[0].shape[0]
    h = srcs[0].shape[2]
    k = L.shape[-1]

    # ---- parameter prep (tiny; in production do this once at parameter setup) ----
    # Fold R into L:  (x @ L) * R == x @ (L * R)
    L_fused = L.astype(jnp.float32) * jnp.reshape(R, (1, k)).astype(jnp.float32)
    # Permute weight rows per source so each source is consumed as a free row-major
    # reshape instead of PyTorch's permute(0,2,1) activation copy.
    x_flats, l_segs, off = [], [], 0
    for s in srcs:
        d_i = s.shape[1]
        seg = L_fused[off:off + h * d_i]                  # rows indexed by hi*d_i + di
        seg = seg.reshape(h, d_i, k).transpose(1, 0, 2).reshape(d_i * h, k)
        l_segs.append(seg)
        x_flats.append(s.reshape(B, d_i * h))             # native dtype, free view
        off += h * d_i
    b2 = jnp.reshape(b, (1, k)).astype(jnp.float32)

    widths = [x.shape[1] for x in x_flats]
    itemsizes = [jnp.dtype(x.dtype).itemsize for x in x_flats]
    D = sum(widths)

    # ---- VMEM-budget-aware batch tiling (per generation) ----
    phys_vmem = _vmem_capacity_bytes()
    vmem_budget = min(phys_vmem * 3 // 4, 96 << 20)   # ~48 MiB v7x, ~96 MiB v5e/v6e
    k_pad = _round_up(k, 128)
    # Real per-row VMEM bytes: each narrow input tile is lane-padded to 128, the
    # output tile too, and all are double-buffered by the BlockSpec pipeline.
    row_bytes = 2 * (sum(_round_up(w, 128) * it for w, it in zip(widths, itemsizes))
                     + k_pad * 4)
    weight_bytes = sum(2 * _round_up(w, 8) * k_pad * 4 for w in widths) + 2 * 8 * k_pad * 4
    usable = max(vmem_budget - weight_bytes - (4 << 20), 1 << 20)

    if tile_b is None:
        tile_b = usable // row_bytes                   # big 1-D grid steps (4k-32k rows)
        tile_b = min(tile_b, 32768)
        if B >= 32:
            # keep >=4 grid steps so "parallel" can shard across both TCs on v7x
            tile_b = min(tile_b, _round_up(pl.cdiv(B, 4), 8))
        # never let the block exceed the batch dim; partial last block covers B%tile_b
        tile_b = min(tile_b, (B // 8) * 8 if B >= 8 else 8)
        tile_b = max(8, (tile_b // 8) * 8)

    # Only the tiny-batch case (B < tile_b, i.e. B < 8) is padded; for large B the
    # non-divisible remainder is handled by a partial last block (OOB writes dropped).
    B_run = B
    if B < tile_b:
        B_run = tile_b
        x_flats = [jnp.pad(x, ((0, B_run - B), (0, 0))) for x in x_flats]
    grid = (pl.cdiv(B_run, tile_b),)

    in_specs = (
        [pl.BlockSpec((tile_b, w), lambda i: (i, 0)) for w in widths]
        + [pl.BlockSpec(seg.shape, lambda i: (0, 0)) for seg in l_segs]
        + [pl.BlockSpec((1, k), lambda i: (0, 0))]
    )

    bytes_accessed = (sum(B * w * it for w, it in zip(widths, itemsizes))
                      + B * k * 4 + D * k * 4 + k * 4)
    cost = pl.CostEstimate(flops=2 * B * D * k,
                           transcendentals=B * k,
                           bytes_accessed=bytes_accessed)

    out = pl.pallas_call(
        _make_gate_kernel(n_src),
        out_shape=jax.ShapeDtypeStruct((B_run, k), jnp.float32),
        grid=grid,
        in_specs=in_specs,
        out_specs=pl.BlockSpec((tile_b, k), lambda i: (i, 0)),
        compiler_params=pltpu.CompilerParams(
            dimension_semantics=("parallel",),         # shards batch tiles across TCs
            vmem_limit_bytes=int(vmem_budget),
        ),
        cost_estimate=cost,
    )(*x_flats, *l_segs, b2)
    return out[:B]


def _reference(srcs, L, R, b):
    B = srcs[0].shape[0]
    xf = jnp.concatenate(
        [jnp.transpose(s, (0, 2, 1)).reshape(B, -1) for s in srcs], axis=1)
    logits = (xf.astype(jnp.float32) @ L) * jnp.reshape(R, (1, -1)) + jnp.reshape(b, (1, -1))
    return jax.nn.softmax(logits, axis=1)


if __name__ == "__main__":
    # Small, module-consistent shapes: batch=2, two sources with d1=4 / d2=3 features,
    # h=8 time steps, k=2 gate outputs  (d_all = 7, D = d_all*h = 56).
    B, h, k = 2, 8, 2
    d_sizes = (4, 3)
    D = sum(d_sizes) * h

    key = jax.random.PRNGKey(0)
    ks = jax.random.split(key, 2 + len(d_sizes))

    srcs = [jax.random.normal(ks[i], (B, d, h), dtype=jnp.float32)
            for i, d in enumerate(d_sizes)]

    # Deterministic parameter init mirroring the PyTorch __init__ (randn*0.01, zero bias)
    L = jax.random.normal(ks[-2], (D, k), dtype=jnp.float32) * 0.01
    R = jax.random.normal(ks[-1], (1, k), dtype=jnp.float32) * 0.01
    b = jnp.zeros((k,), dtype=jnp.float32)

    out = gate_forward(srcs, L, R, b)
    jax.block_until_ready(out)
    ref = _reference(srcs, L, R, b)
    assert out.shape == (B, k)
    assert jnp.allclose(out, ref, atol=1e-5, rtol=1e-5)
    assert jnp.allclose(jnp.sum(out, axis=1), jnp.ones((B,)), atol=1e-5)

    # Also exercise the no-pad partial-last-block path (B not divisible by tile_b).
    B2 = 70
    ks2 = jax.random.split(jax.random.PRNGKey(1), len(d_sizes))
    srcs2 = [jax.random.normal(ks2[i], (B2, d, h), dtype=jnp.float32)
             for i, d in enumerate(d_sizes)]
    out2 = gate_forward(srcs2, L, R, b)
    jax.block_until_ready(out2)
    ref2 = _reference(srcs2, L, R, b)
    assert out2.shape == (B2, k)
    assert jnp.allclose(out2, ref2, atol=1e-5, rtol=1e-5)
    assert jnp.allclose(jnp.sum(out2, axis=1), jnp.ones((B2,)), atol=1e-5)

    print("KERNEL_OK")
</pallas_src>

<mosaic_0001>
module attributes {stable_mosaic.version = 11 : i64} {
  func.func @kernel(%arg0: i32, %arg1: memref<8x32xf32, #tpu.memory_space<vmem>>, %arg2: memref<8x24xf32, #tpu.memory_space<vmem>>, %arg3: memref<32x2xf32, #tpu.memory_space<vmem>>, %arg4: memref<24x2xf32, #tpu.memory_space<vmem>>, %arg5: memref<1x2xf32, #tpu.memory_space<vmem>>, %arg6: memref<8x2xf32, #tpu.memory_space<vmem>>) attributes {dimension_semantics = [#tpu.dimension_semantics<parallel>], iteration_bounds = array<i64: 1>, scalar_prefetch = 0 : i64, scratch_operands = 0 : i64, tpu.core_type = #tpu.core_type<tc>, window_params = [{transform_indices = @transform_0, window_bounds = array<i64: 8, 32>}, {transform_indices = @transform_1, window_bounds = array<i64: 8, 24>}, {pipeline_mode = #tpu.pipeline_mode<synchronous>, transform_indices = @transform_2, window_bounds = array<i64: 32, 2>}, {pipeline_mode = #tpu.pipeline_mode<synchronous>, transform_indices = @transform_3, window_bounds = array<i64: 24, 2>}, {pipeline_mode = #tpu.pipeline_mode<synchronous>, transform_indices = @transform_4, window_bounds = array<i64: 1, 2>}, {transform_indices = @transform_5, window_bounds = array<i64: 8, 2>}]} {
    %c0 = arith.constant 0 : index
    %c0_0 = arith.constant 0 : index
    %0 = vector.load %arg1[%c0, %c0_0] : memref<8x32xf32, #tpu.memory_space<vmem>>, vector<8x32xf32>
    %c0_1 = arith.constant 0 : index
    %c0_2 = arith.constant 0 : index
    %1 = vector.load %arg3[%c0_1, %c0_2] : memref<32x2xf32, #tpu.memory_space<vmem>>, vector<32x2xf32>
    %cst = arith.constant dense<0.000000e+00> : vector<8x2xf32>
    %2 = tpu.matmul %0, %1, %cst {dimension_numbers = #tpu.dot_dimension_numbers<[1], [0], [0], [1], [0, 0, 1, 1], [], []>} : vector<8x32xf32>, vector<32x2xf32>, vector<8x2xf32> -> vector<8x2xf32>
    %c0_3 = arith.constant 0 : index
    %c0_4 = arith.constant 0 : index
    %3 = vector.load %arg2[%c0_3, %c0_4] : memref<8x24xf32, #tpu.memory_space<vmem>>, vector<8x24xf32>
    %c0_5 = arith.constant 0 : index
    %c0_6 = arith.constant 0 : index
    %4 = vector.load %arg4[%c0_5, %c0_6] : memref<24x2xf32, #tpu.memory_space<vmem>>, vector<24x2xf32>
    %cst_7 = arith.constant dense<0.000000e+00> : vector<8x2xf32>
    %5 = tpu.matmul %3, %4, %cst_7 {dimension_numbers = #tpu.dot_dimension_numbers<[1], [0], [0], [1], [0, 0, 1, 1], [], []>} : vector<8x24xf32>, vector<24x2xf32>, vector<8x2xf32> -> vector<8x2xf32>
    %6 = arith.addf %2, %5 : vector<8x2xf32>
    %c0_8 = arith.constant 0 : index
    %c0_9 = arith.constant 0 : index
    %7 = vector.load %arg5[%c0_8, %c0_9] : memref<1x2xf32, #tpu.memory_space<vmem>>, vector<1x2xf32>
    %8 = vector.broadcast %7 : vector<1x2xf32> to vector<8x2xf32>
    %9 = arith.addf %6, %8 : vector<8x2xf32>
    %cst_10 = arith.constant dense<0xFF800000> : vector<8xf32>
    %10 = vector.multi_reduction <maximumf>, %9, %cst_10 [1] : vector<8x2xf32> to vector<8xf32>
    %11 = vector.shape_cast %10 : vector<8xf32> to vector<8x1xf32>
    %12 = vector.broadcast %11 : vector<8x1xf32> to vector<8x2xf32>
    %13 = arith.subf %9, %12 : vector<8x2xf32>
    %14 = math.exp %13 : vector<8x2xf32>
    %cst_11 = arith.constant dense<0.000000e+00> : vector<8xf32>
    %15 = vector.multi_reduction <add>, %14, %cst_11 [1] : vector<8x2xf32> to vector<8xf32>
    %16 = vector.shape_cast %15 : vector<8xf32> to vector<8x1xf32>
    %17 = vector.broadcast %16 : vector<8x1xf32> to vector<8x2xf32>
    %18 = arith.divf %14, %17 : vector<8x2xf32>
    %c0_12 = arith.constant 0 : index
    %c0_13 = arith.constant 0 : index
    %19 = vector.load %arg6[%c0_12, %c0_13] : memref<8x2xf32, #tpu.memory_space<vmem>>, vector<8x2xf32>
    tpu.vector_store %arg6[%c0_12, %c0_13], %18 {strides = array<i32>} : memref<8x2xf32, #tpu.memory_space<vmem>>, vector<8x2xf32>,
    return
  }
  func.func @transform_0(%arg0: i32) -> (i32, i32) {
    %c0_i32 = arith.constant 0 : i32
    %c0_i32_0 = arith.constant 0 : i32
    return %arg0, %c0_i32 : i32, i32
  }
  func.func @transform_1(%arg0: i32) -> (i32, i32) {
    %c0_i32 = arith.constant 0 : i32
    %c0_i32_0 = arith.constant 0 : i32
    return %arg0, %c0_i32 : i32, i32
  }
  func.func @transform_2(%arg0: i32) -> (i32, i32) {
    %c0_i32 = arith.constant 0 : i32
    %c0_i32_0 = arith.constant 0 : i32
    %c0_i32_1 = arith.constant 0 : i32
    return %c0_i32, %c0_i32_0 : i32, i32
  }
  func.func @transform_3(%arg0: i32) -> (i32, i32) {
    %c0_i32 = arith.constant 0 : i32
    %c0_i32_0 = arith.constant 0 : i32
    %c0_i32_1 = arith.constant 0 : i32
    return %c0_i32, %c0_i32_0 : i32, i32
  }
  func.func @transform_4(%arg0: i32) -> (i32, i32) {
    %c0_i32 = arith.constant 0 : i32
    %c0_i32_0 = arith.constant 0 : i32
    %c0_i32_1 = arith.constant 0 : i32
    return %c0_i32, %c0_i32_0 : i32, i32
  }
  func.func @transform_5(%arg0: i32) -> (i32, i32) {
    %c0_i32 = arith.constant 0 : i32
    %c0_i32_0 = arith.constant 0 : i32
    return %arg0, %c0_i32 : i32, i32
  }
}

</mosaic_0001>

<bundles_post_ra>
// kernel: tpu_custom_call.1
= control target key start
LH: loop header
LB: loop body
LE: loop exit
PB: predicated region body
PF: predicated region fallthrough
CT: control target
= control target key end

     0   :  { %v250_v0 = vmov 0.0|0.0   ;;  %vm251_vm0 = vmmov 0   ;;  %v252_v8 = vmov 0.0   ;;  %vm29_vm1 = vcmask 195584   ;;  %s319_s2 = inlined_call_operand.vmem [shape: f32[32,2], index: 2, kind: input, shape index: {}]   ;;  %s320_s3 = inlined_call_operand.vmem [shape: f32[24,2], index: 3, kind: input, shape index: {}]   ;;  %s321_s1 = inlined_call_operand.vmem [shape: f32[8,24], index: 1, kind: input, shape index: {}]   ;;  %s322_s0 = inlined_call_operand.vmem [shape: f32[8,32], index: 0, kind: input, shape index: {}]   ;;  %s323_s4 = inlined_call_operand.vmem [shape: f32[1,2], index: 4, kind: input, shape index: {}]   ;;  %s324_s5 = inlined_call_operand.vmem [shape: f32[8,2], index: 5, kind: output, shape index: {}]  }
   0x1   :  { %237 = vmatprep.subr.bf16.mxu1 %v250_v0  ;;  %234 = vmatprep.subr.bf16.mxu0 %v250_v0  ;;  %v21_v1 = vld [vmem:[%s319_s2] sm:$0xff]  ;;  %v22_v2 = vld [vmem:[%s319_s2 + $0x8] sm:$0xff]  ;;  %v23_v6 = vld [vmem:[%s319_s2 + $0x10] sm:$0xff]  ;;  %vm103_vm2 = vcmask 261120   ;;  %vm185_vm3 = vcmask 15360  }
   0x2   :  { %v26_v3 = vld [vmem:[%s320_s3] sm:$0xff]  ;;  %v238_v4 = vpack.c.bf16 %v22_v2, %v21_v1  ;;  %v27_v5 = vld [vmem:[%s320_s3 + $0x8] sm:$0xff]  ;;  %v24_v7 = vld [vmem:[%s319_s2 + $0x18] sm:$0xff]  ;;  %220 = vmatprep.mubr.msk.f32.mxu0 %vm251_vm0, %v252_v8  ;;  %231 = vmatprep.mubr.msk.f32.mxu1 %vm251_vm0, %v252_v8 }
   0x3   :  { %v235_v9 = vpack.c.bf16 %v27_v5, %v26_v3  ;;  %v241_v10 = vpack.c.bf16 %v24_v7, %v23_v6  ;;  %v28_v11 = vld [vmem:[%s320_s3 + $0x10] sm:$0xff]  ;;  %v25_v12 = vld [vmem:[%s321_s1] sm:$0xff] }
   0x4   :  { %239 = vmatpush3.bf16.msra.mxu1 %v238_v4  ;;  %v20_v13 = vld [vmem:[%s322_s0] sm:$0xff] }
   0x5   :  { %236 = vmatpush3.bf16.msra.mxu0 %v235_v9  ;;  %240 = vmatprep.subr.bf16.mxu1 %v250_v0  ;;  %v204_v17 = vld [vmem:[%s323_s4] ss:$0 sm:$0xff] }
   0x6   :  { %218 = vmatprep.subr.mxu0 %v252_v8 }
   0x8   :  { %242 = vmatpush3.bf16.msra.mxu1 %v241_v10 }
   0x9   :  { %219 = vmatpush3.msra.mxu0 %v28_v11 }
   0xa   :  { %221 = vmatmul.mubr.msk.f32.vlgmr.msra.gmra.mrb[0].mxu0 %vm29_vm1, %v25_v12 }
   0xb   :  { %232 = vmatmul.mubr.msk.f32.vlgmr.msra.gmra.mrb[0].mxu1 %vm103_vm2, %v20_v13 }
  0xdd   :  { %v99_v14 = vpop.f32.mrb[0].mxu0 }
  0xde   :  { %v222_v15 = vpop.f32.mrb[1].mxu0  ;;  %v173_v16 = vpop.f32.mrb[0].mxu1 }
  0xdf   :  { %v174_v18 = vadd.f32 %v173_v16, %v99_v14  ;;  %v233_v19 = vpop.f32.mrb[1].mxu1 }
  0xe1   :  { %v184_v20 = vadd.f32 %v204_v17, %v174_v18 }
  0xe3   :  { %v186_v21 = vsel %vm185_vm3, %v184_v20, -inf }
  0xe4   :  { %187 = vmax.xlane.f32.xlu0 %v186_v21 }
 0x171   :  { %v188_v22 = vpop.xlane.xlu0 %187 }
 0x172   :  { %v189_v23 = vsub.f32 %v184_v20, %v188_v22 }
 0x174   :  { %v190_v24 = vmul.f32 1.442695, %v189_v23 }
 0x176   :  { %246 = vpow2.f32 %v190_v24 }
 0x180   :  { %v247_v25 = vpop.eup %246 }
 0x181   :  { %v192_v26 = vsel %vm185_vm3, %v247_v25, 0.0 }
 0x182   :  { %193 = vadd.xlane.f32.xlu0 %v192_v26 }
 0x20f   :  { %v194_v27 = vpop.xlane.xlu0 %193 }
 0x210   :  { %248 = vrcp.f32 %v194_v27 }
 0x21a   :  { %v249_v28 = vpop.eup %248 }
 0x21b   :  { %v196_v29 = vmul.f32 %v249_v28, %v247_v25 }
 0x21d   :  { %197 = vst.msk [vmem:[%s324_s5] sm:$0xff] %vm185_vm3, %v196_v29 }

</bundles_post_ra>
